<compile_context>
chip_gen: v7x
topology: tpu7x:2x2x1
jax: 0.10.0
libtpu: 0.0.40
codegen_flags: <defaults>
</compile_context>

<pallas_src>
import functools

import jax
import jax.numpy as jnp
from jax.experimental import pallas as pl
from jax.experimental.pallas import tpu as pltpu


_TARGET_LANES = 512                     # aim for 256-512-lane output rows
_VMEM_TARGET_BYTES = 32 * 1024 * 1024   # pipelined working-set target
_VMEM_LIMIT_BYTES = 48 * 1024 * 1024    # scoped VMEM limit (<= v7x physical 64 MiB)


def _fold_factor(T, E):
    """Largest F dividing T with (F*E) % 128 == 0 and F*E <= _TARGET_LANES.

    Falls back to the smallest lane-dense F, else 1 (masked stores)."""
    candidates = [f for f in range(1, T + 1)
                  if T % f == 0 and (f * E) % 128 == 0]
    if not candidates:
        # TODO(synk): when no fold reaches a 128-lane multiple (odd E*T combos)
        # stores stay masked; padding E would cost an extra HBM pass, so we
        # accept the masked-store penalty on that rare path.
        return 1
    under = [f for f in candidates if f * E <= _TARGET_LANES]
    return max(under) if under else min(candidates)


def _choose_time_tile(Tf, per_row_bytes, resident_bytes, batch):
    """Folded-time tile: as big as the VMEM target allows (multiple of 8)."""
    budget = max(0, _VMEM_TARGET_BYTES - resident_bytes)
    cap = budget // max(1, 2 * per_row_bytes)   # x2 for double buffering
    cap = max(8, (cap // 8) * 8)
    tT = Tf if Tf <= cap else cap
    # Keep >= 2 grid steps so both v7x TensorCores get work even at batch 1.
    if batch == 1 and tT == Tf and Tf >= 16:
        tT = max(8, ((Tf // 2) // 8) * 8)
    return tT


def _tbc_kernel(v_ref, p_ref, wv_ref, bv_ref, wp_ref, bp_ref, o_ref,
                *, n_vehicle, n_bridge, n_pier):
    """One grid step = one (batch, folded-time-tile) slab of the fused output.

    v_ref : (1, Nv, tT, Kv)        folded vehicle features
    p_ref : (1, Np, tT, Kp)        folded pier features
    wv_ref: (Kv, lane_w)           block-diagonal vehicle weight (resident)
    bv_ref: (1, lane_w)            tiled vehicle bias
    wp_ref: (Kp, lane_w)           block-diagonal pier weight (resident)
    bp_ref: (1, lane_w)            tiled pier bias
    o_ref : (1, Nv+Nb+Np, tT, lane_w)  lane-dense output block
    """
    out_dtype = o_ref.dtype
    tT, lane_w = o_ref.shape[2], o_ref.shape[3]
    fused = (tT % 8 == 0)   # (N, tT, K) -> (N*tT, K) reshape is layout-free then

    def emit(x_ref, w_ref, b_ref, n_nodes, node_off):
        if n_nodes == 0:
            return
        if fused:
            k = x_ref.shape[3]
            x2 = x_ref[0].reshape(n_nodes * tT, k)
            y = jnp.dot(x2, w_ref[...],
                        preferred_element_type=jnp.float32) + b_ref[...]
            o_ref[0, node_off:node_off + n_nodes] = (
                y.reshape(n_nodes, tT, lane_w).astype(out_dtype))
        else:
            # Small folded-time tiles (toy shapes): per-node matmuls.
            for n in range(n_nodes):
                y = jnp.dot(x_ref[0, n], w_ref[...],
                            preferred_element_type=jnp.float32) + b_ref[...]
                o_ref[0, node_off + n] = y.astype(out_dtype)

    # Vehicle nodes -> output nodes [0, Nv).
    emit(v_ref, wv_ref, bv_ref, n_vehicle, 0)

    # Bridge nodes: reference zeroes this slice -> one contiguous zero slab,
    # no HBM read, no matmul (bit-identical to the reference).
    if n_bridge > 0:
        o_ref[0, n_vehicle:n_vehicle + n_bridge] = jnp.zeros(
            (n_bridge, tT, lane_w), out_dtype)

    # Pier nodes -> output nodes [Nv+Nb, Nv+Nb+Np).
    emit(p_ref, wp_ref, bp_ref, n_pier, n_vehicle + n_bridge)


def tbc_embedding_forward(params, vehicle_features, bridge_features,
                          pier_features):
    """JAX/Pallas equivalent of TBCEmbedding.forward.

    vehicle_features: (B, Nv, T, Dv)
    bridge_features : (B, Nb, T, Db)   (only its node count matters: output is 0)
    pier_features   : (B, Np, T, Dp)
    returns         : (B, Nv+Nb+Np, T, E)
    """
    B, Nv, T, Dv = vehicle_features.shape
    _, Nb, _, _ = bridge_features.shape
    _, Npi, _, Dp = pier_features.shape
    E = params["vehicle_w"].shape[1]
    n_total = Nv + Nb + Npi
    dtype = vehicle_features.dtype
    itemsize = jnp.dtype(dtype).itemsize

    # Fold F time steps into the lane axis for 256-512-lane unmasked stores.
    F = _fold_factor(T, E)
    Tf = T // F
    lane_w = F * E
    Kv, Kp = F * Dv, F * Dp

    # Contiguous (free) reshapes; no data movement in the wrapper.
    vf = vehicle_features.reshape(B, Nv, Tf, Kv)
    pf = pier_features.reshape(B, Npi, Tf, Kp)

    # Block-diagonal weights / tiled biases reproduce the per-time-step Linear
    # exactly under the fold.
    wdt = params["vehicle_w"].dtype
    w_itemsize = jnp.dtype(wdt).itemsize
    eye = jnp.eye(F, dtype=wdt)
    wv = jnp.kron(eye, params["vehicle_w"])                    # (Kv, lane_w)
    wp = jnp.kron(eye, params["pier_w"])                       # (Kp, lane_w)
    bv = jnp.tile(params["vehicle_b"], F).reshape(1, lane_w)
    bp = jnp.tile(params["pier_b"], F).reshape(1, lane_w)

    # Tile the folded-time axis: big blocks (typ. 8-16 MiB output) within VMEM.
    per_row_bytes = (n_total * lane_w + Nv * Kv + Npi * Kp) * itemsize
    resident_bytes = (wv.size + wp.size + bv.size + bp.size) * w_itemsize
    tT = _choose_time_tile(Tf, per_row_bytes, resident_bytes, B)
    grid = (B, pl.cdiv(Tf, tT))

    kernel = functools.partial(
        _tbc_kernel, n_vehicle=Nv, n_bridge=Nb, n_pier=Npi)

    flops = 2 * B * T * (Nv * Dv + Npi * Dp) * E
    bytes_accessed = int(
        (vehicle_features.size + pier_features.size) * itemsize
        + (wv.size + wp.size + bv.size + bp.size) * w_itemsize
        + B * n_total * T * E * itemsize)

    out_folded = pl.pallas_call(
        kernel,
        out_shape=jax.ShapeDtypeStruct((B, n_total, Tf, lane_w), dtype),
        grid_spec=pltpu.PrefetchScalarGridSpec(
            num_scalar_prefetch=0,
            grid=grid,
            in_specs=[
                pl.BlockSpec((1, Nv, tT, Kv), lambda b, t: (b, 0, t, 0)),
                pl.BlockSpec((1, Npi, tT, Kp), lambda b, t: (b, 0, t, 0)),
                pl.BlockSpec((Kv, lane_w), lambda b, t: (0, 0)),   # resident
                pl.BlockSpec((1, lane_w), lambda b, t: (0, 0)),
                pl.BlockSpec((Kp, lane_w), lambda b, t: (0, 0)),   # resident
                pl.BlockSpec((1, lane_w), lambda b, t: (0, 0)),
            ],
            out_specs=pl.BlockSpec((1, n_total, tT, lane_w),
                                   lambda b, t: (b, 0, t, 0)),
        ),
        compiler_params=pltpu.CompilerParams(
            dimension_semantics=("parallel", "parallel"),
            vmem_limit_bytes=_VMEM_LIMIT_BYTES),
        cost_estimate=pl.CostEstimate(
            flops=flops, transcendentals=0, bytes_accessed=bytes_accessed),
    )(vf, pf, wv, bv, wp, bp)

    # Inverse contiguous (free) reshape back to (B, Ntot, T, E).
    return out_folded.reshape(B, n_total, T, E)


def init_params(key, vehicle_dim, bridge_dim, pier_dim, embed_dim):
    """Deterministic synthetic init mirroring nn.Linear(in, out) shapes."""
    keys = jax.random.split(key, 6)

    def linear_init(kw, kb, in_dim, out_dim):
        bound = 1.0 / jnp.sqrt(in_dim)
        w = jax.random.uniform(kw, (in_dim, out_dim), jnp.float32, -bound, bound)
        b = jax.random.uniform(kb, (out_dim,), jnp.float32, -bound, bound)
        return w, b

    vw, vb = linear_init(keys[0], keys[1], vehicle_dim, embed_dim)
    bw, bb = linear_init(keys[2], keys[3], bridge_dim, embed_dim)
    pw, pb = linear_init(keys[4], keys[5], pier_dim, embed_dim)
    return {
        "vehicle_w": vw, "vehicle_b": vb,
        # Bridge Linear params kept for parity with the module; the reference
        # forward zeroes the bridge embedding, so they never affect the output.
        "bridge_w": bw, "bridge_b": bb,
        "pier_w": pw, "pier_b": pb,
    }


if __name__ == "__main__":
    # Small shapes consistent with the forward signature.
    B, T = 2, 8
    Nv, Nb, Np = 3, 4, 2
    vehicle_dim, bridge_dim, pier_dim, embed_dim = 6, 5, 4, 32

    key = jax.random.PRNGKey(0)
    kp, kv, kb_, kpi = jax.random.split(key, 4)

    params = init_params(kp, vehicle_dim, bridge_dim, pier_dim, embed_dim)

    vehicle_features = jax.random.normal(kv, (B, Nv, T, vehicle_dim), jnp.float32)
    bridge_features = jax.random.normal(kb_, (B, Nb, T, bridge_dim), jnp.float32)
    pier_features = jax.random.normal(kpi, (B, Np, T, pier_dim), jnp.float32)

    fwd = jax.jit(tbc_embedding_forward)
    out = fwd(params, vehicle_features, bridge_features, pier_features)
    out = jax.block_until_ready(out)

    # Correctness check against plain-JAX reference.
    ref_v = vehicle_features @ params["vehicle_w"] + params["vehicle_b"]
    ref_b = jnp.zeros((B, Nb, T, embed_dim), jnp.float32)
    ref_p = pier_features @ params["pier_w"] + params["pier_b"]
    ref = jnp.concatenate([ref_v, ref_b, ref_p], axis=1)

    assert out.shape == (B, Nv + Nb + Np, T, embed_dim), out.shape
    assert jnp.allclose(out, ref, atol=1e-5, rtol=1e-5)

    print("KERNEL_OK")
</pallas_src>

<mosaic_0001>
module attributes {stable_mosaic.version = 11 : i64} {
  func.func @_tbc_kernel(%arg0: i32, %arg1: i32, %arg2: memref<1x3x1x48xf32, #tpu.memory_space<vmem>>, %arg3: memref<1x2x1x32xf32, #tpu.memory_space<vmem>>, %arg4: memref<48x256xf32, #tpu.memory_space<vmem>>, %arg5: memref<1x256xf32, #tpu.memory_space<vmem>>, %arg6: memref<32x256xf32, #tpu.memory_space<vmem>>, %arg7: memref<1x256xf32, #tpu.memory_space<vmem>>, %arg8: memref<1x9x1x256xf32, #tpu.memory_space<vmem>>) attributes {dimension_semantics = [#tpu.dimension_semantics<parallel>, #tpu.dimension_semantics<parallel>], iteration_bounds = array<i64: 2, 1>, scalar_prefetch = 0 : i64, scratch_operands = 0 : i64, tpu.core_type = #tpu.core_type<tc>, window_params = [{transform_indices = @transform_0, window_bounds = array<i64: 1, 3, 1, 48>}, {transform_indices = @transform_1, window_bounds = array<i64: 1, 2, 1, 32>}, {pipeline_mode = #tpu.pipeline_mode<synchronous>, transform_indices = @transform_2, window_bounds = array<i64: 48, 256>}, {pipeline_mode = #tpu.pipeline_mode<synchronous>, transform_indices = @transform_3, window_bounds = array<i64: 1, 256>}, {pipeline_mode = #tpu.pipeline_mode<synchronous>, transform_indices = @transform_4, window_bounds = array<i64: 32, 256>}, {pipeline_mode = #tpu.pipeline_mode<synchronous>, transform_indices = @transform_5, window_bounds = array<i64: 1, 256>}, {transform_indices = @transform_6, window_bounds = array<i64: 1, 9, 1, 256>}]} {
    %c0 = arith.constant 0 : index
    %c0_0 = arith.constant 0 : index
    %c0_1 = arith.constant 0 : index
    %c0_2 = arith.constant 0 : index
    %0 = vector.load %arg2[%c0, %c0_0, %c0_1, %c0_2] : memref<1x3x1x48xf32, #tpu.memory_space<vmem>>, vector<1x1x1x48xf32>
    %1 = vector.shape_cast %0 : vector<1x1x1x48xf32> to vector<1x48xf32>
    %c0_3 = arith.constant 0 : index
    %c0_4 = arith.constant 0 : index
    %2 = vector.load %arg4[%c0_3, %c0_4] : memref<48x256xf32, #tpu.memory_space<vmem>>, vector<48x256xf32>
    %cst = arith.constant dense<0.000000e+00> : vector<1x256xf32>
    %3 = tpu.matmul %1, %2, %cst {dimension_numbers = #tpu.dot_dimension_numbers<[1], [0], [0], [1], [0, 0, 1, 1], [], []>} : vector<1x48xf32>, vector<48x256xf32>, vector<1x256xf32> -> vector<1x256xf32>
    %c0_5 = arith.constant 0 : index
    %c0_6 = arith.constant 0 : index
    %4 = vector.load %arg5[%c0_5, %c0_6] : memref<1x256xf32, #tpu.memory_space<vmem>>, vector<1x256xf32>
    %5 = arith.addf %3, %4 : vector<1x256xf32>
    %c0_7 = arith.constant 0 : index
    %c0_8 = arith.constant 0 : index
    %c0_9 = arith.constant 0 : index
    %c0_10 = arith.constant 0 : index
    %6 = vector.load %arg8[%c0_7, %c0_8, %c0_9, %c0_10] : memref<1x9x1x256xf32, #tpu.memory_space<vmem>>, vector<1x1x1x256xf32>
    %7 = vector.shape_cast %6 : vector<1x1x1x256xf32> to vector<1x256xf32>
    %8 = vector.shape_cast %5 : vector<1x256xf32> to vector<1x1x1x256xf32>
    tpu.vector_store %arg8[%c0_7, %c0_8, %c0_9, %c0_10], %8 {strides = array<i32>} : memref<1x9x1x256xf32, #tpu.memory_space<vmem>>, vector<1x1x1x256xf32>,
    %c0_11 = arith.constant 0 : index
    %c1 = arith.constant 1 : index
    %c0_12 = arith.constant 0 : index
    %c0_13 = arith.constant 0 : index
    %9 = vector.load %arg2[%c0_11, %c1, %c0_12, %c0_13] : memref<1x3x1x48xf32, #tpu.memory_space<vmem>>, vector<1x1x1x48xf32>
    %10 = vector.shape_cast %9 : vector<1x1x1x48xf32> to vector<1x48xf32>
    %c0_14 = arith.constant 0 : index
    %c0_15 = arith.constant 0 : index
    %11 = vector.load %arg4[%c0_14, %c0_15] : memref<48x256xf32, #tpu.memory_space<vmem>>, vector<48x256xf32>
    %cst_16 = arith.constant dense<0.000000e+00> : vector<1x256xf32>
    %12 = tpu.matmul %10, %11, %cst_16 {dimension_numbers = #tpu.dot_dimension_numbers<[1], [0], [0], [1], [0, 0, 1, 1], [], []>} : vector<1x48xf32>, vector<48x256xf32>, vector<1x256xf32> -> vector<1x256xf32>
    %c0_17 = arith.constant 0 : index
    %c0_18 = arith.constant 0 : index
    %13 = vector.load %arg5[%c0_17, %c0_18] : memref<1x256xf32, #tpu.memory_space<vmem>>, vector<1x256xf32>
    %14 = arith.addf %12, %13 : vector<1x256xf32>
    %c0_19 = arith.constant 0 : index
    %c1_20 = arith.constant 1 : index
    %c0_21 = arith.constant 0 : index
    %c0_22 = arith.constant 0 : index
    %15 = vector.load %arg8[%c0_19, %c1_20, %c0_21, %c0_22] : memref<1x9x1x256xf32, #tpu.memory_space<vmem>>, vector<1x1x1x256xf32>
    %16 = vector.shape_cast %15 : vector<1x1x1x256xf32> to vector<1x256xf32>
    %17 = vector.shape_cast %14 : vector<1x256xf32> to vector<1x1x1x256xf32>
    tpu.vector_store %arg8[%c0_19, %c1_20, %c0_21, %c0_22], %17 {strides = array<i32>} : memref<1x9x1x256xf32, #tpu.memory_space<vmem>>, vector<1x1x1x256xf32>,
    %c0_23 = arith.constant 0 : index
    %c2 = arith.constant 2 : index
    %c0_24 = arith.constant 0 : index
    %c0_25 = arith.constant 0 : index
    %18 = vector.load %arg2[%c0_23, %c2, %c0_24, %c0_25] : memref<1x3x1x48xf32, #tpu.memory_space<vmem>>, vector<1x1x1x48xf32>
    %19 = vector.shape_cast %18 : vector<1x1x1x48xf32> to vector<1x48xf32>
    %c0_26 = arith.constant 0 : index
    %c0_27 = arith.constant 0 : index
    %20 = vector.load %arg4[%c0_26, %c0_27] : memref<48x256xf32, #tpu.memory_space<vmem>>, vector<48x256xf32>
    %cst_28 = arith.constant dense<0.000000e+00> : vector<1x256xf32>
    %21 = tpu.matmul %19, %20, %cst_28 {dimension_numbers = #tpu.dot_dimension_numbers<[1], [0], [0], [1], [0, 0, 1, 1], [], []>} : vector<1x48xf32>, vector<48x256xf32>, vector<1x256xf32> -> vector<1x256xf32>
    %c0_29 = arith.constant 0 : index
    %c0_30 = arith.constant 0 : index
    %22 = vector.load %arg5[%c0_29, %c0_30] : memref<1x256xf32, #tpu.memory_space<vmem>>, vector<1x256xf32>
    %23 = arith.addf %21, %22 : vector<1x256xf32>
    %c0_31 = arith.constant 0 : index
    %c2_32 = arith.constant 2 : index
    %c0_33 = arith.constant 0 : index
    %c0_34 = arith.constant 0 : index
    %24 = vector.load %arg8[%c0_31, %c2_32, %c0_33, %c0_34] : memref<1x9x1x256xf32, #tpu.memory_space<vmem>>, vector<1x1x1x256xf32>
    %25 = vector.shape_cast %24 : vector<1x1x1x256xf32> to vector<1x256xf32>
    %26 = vector.shape_cast %23 : vector<1x256xf32> to vector<1x1x1x256xf32>
    tpu.vector_store %arg8[%c0_31, %c2_32, %c0_33, %c0_34], %26 {strides = array<i32>} : memref<1x9x1x256xf32, #tpu.memory_space<vmem>>, vector<1x1x1x256xf32>,
    %cst_35 = arith.constant 0.000000e+00 : f32
    %27 = vector.broadcast %cst_35 : f32 to vector<4x1x256xf32>
    %c0_36 = arith.constant 0 : index
    %c3 = arith.constant 3 : index
    %c0_37 = arith.constant 0 : index
    %c0_38 = arith.constant 0 : index
    %28 = vector.load %arg8[%c0_36, %c3, %c0_37, %c0_38] : memref<1x9x1x256xf32, #tpu.memory_space<vmem>>, vector<1x4x1x256xf32>
    %29 = vector.shape_cast %28 : vector<1x4x1x256xf32> to vector<4x1x256xf32>
    %30 = vector.shape_cast %27 : vector<4x1x256xf32> to vector<1x4x1x256xf32>
    tpu.vector_store %arg8[%c0_36, %c3, %c0_37, %c0_38], %30 {strides = array<i32>} : memref<1x9x1x256xf32, #tpu.memory_space<vmem>>, vector<1x4x1x256xf32>,
    %c0_39 = arith.constant 0 : index
    %c0_40 = arith.constant 0 : index
    %c0_41 = arith.constant 0 : index
    %c0_42 = arith.constant 0 : index
    %31 = vector.load %arg3[%c0_39, %c0_40, %c0_41, %c0_42] : memref<1x2x1x32xf32, #tpu.memory_space<vmem>>, vector<1x1x1x32xf32>
    %32 = vector.shape_cast %31 : vector<1x1x1x32xf32> to vector<1x32xf32>
    %c0_43 = arith.constant 0 : index
    %c0_44 = arith.constant 0 : index
    %33 = vector.load %arg6[%c0_43, %c0_44] : memref<32x256xf32, #tpu.memory_space<vmem>>, vector<32x256xf32>
    %cst_45 = arith.constant dense<0.000000e+00> : vector<1x256xf32>
    %34 = tpu.matmul %32, %33, %cst_45 {dimension_numbers = #tpu.dot_dimension_numbers<[1], [0], [0], [1], [0, 0, 1, 1], [], []>} : vector<1x32xf32>, vector<32x256xf32>, vector<1x256xf32> -> vector<1x256xf32>
    %c0_46 = arith.constant 0 : index
    %c0_47 = arith.constant 0 : index
    %35 = vector.load %arg7[%c0_46, %c0_47] : memref<1x256xf32, #tpu.memory_space<vmem>>, vector<1x256xf32>
    %36 = arith.addf %34, %35 : vector<1x256xf32>
    %c0_48 = arith.constant 0 : index
    %c7 = arith.constant 7 : index
    %c0_49 = arith.constant 0 : index
    %c0_50 = arith.constant 0 : index
    %37 = vector.load %arg8[%c0_48, %c7, %c0_49, %c0_50] : memref<1x9x1x256xf32, #tpu.memory_space<vmem>>, vector<1x1x1x256xf32>
    %38 = vector.shape_cast %37 : vector<1x1x1x256xf32> to vector<1x256xf32>
    %39 = vector.shape_cast %36 : vector<1x256xf32> to vector<1x1x1x256xf32>
    tpu.vector_store %arg8[%c0_48, %c7, %c0_49, %c0_50], %39 {strides = array<i32>} : memref<1x9x1x256xf32, #tpu.memory_space<vmem>>, vector<1x1x1x256xf32>,
    %c0_51 = arith.constant 0 : index
    %c1_52 = arith.constant 1 : index
    %c0_53 = arith.constant 0 : index
    %c0_54 = arith.constant 0 : index
    %40 = vector.load %arg3[%c0_51, %c1_52, %c0_53, %c0_54] : memref<1x2x1x32xf32, #tpu.memory_space<vmem>>, vector<1x1x1x32xf32>
    %41 = vector.shape_cast %40 : vector<1x1x1x32xf32> to vector<1x32xf32>
    %c0_55 = arith.constant 0 : index
    %c0_56 = arith.constant 0 : index
    %42 = vector.load %arg6[%c0_55, %c0_56] : memref<32x256xf32, #tpu.memory_space<vmem>>, vector<32x256xf32>
    %cst_57 = arith.constant dense<0.000000e+00> : vector<1x256xf32>
    %43 = tpu.matmul %41, %42, %cst_57 {dimension_numbers = #tpu.dot_dimension_numbers<[1], [0], [0], [1], [0, 0, 1, 1], [], []>} : vector<1x32xf32>, vector<32x256xf32>, vector<1x256xf32> -> vector<1x256xf32>
    %c0_58 = arith.constant 0 : index
    %c0_59 = arith.constant 0 : index
    %44 = vector.load %arg7[%c0_58, %c0_59] : memref<1x256xf32, #tpu.memory_space<vmem>>, vector<1x256xf32>
    %45 = arith.addf %43, %44 : vector<1x256xf32>
    %c0_60 = arith.constant 0 : index
    %c8 = arith.constant 8 : index
    %c0_61 = arith.constant 0 : index
    %c0_62 = arith.constant 0 : index
    %46 = vector.load %arg8[%c0_60, %c8, %c0_61, %c0_62] : memref<1x9x1x256xf32, #tpu.memory_space<vmem>>, vector<1x1x1x256xf32>
    %47 = vector.shape_cast %46 : vector<1x1x1x256xf32> to vector<1x256xf32>
    %48 = vector.shape_cast %45 : vector<1x256xf32> to vector<1x1x1x256xf32>
    tpu.vector_store %arg8[%c0_60, %c8, %c0_61, %c0_62], %48 {strides = array<i32>} : memref<1x9x1x256xf32, #tpu.memory_space<vmem>>, vector<1x1x1x256xf32>,
    return
  }
  func.func @transform_0(%arg0: i32, %arg1: i32) -> (i32, i32, i32, i32) {
    %c0_i32 = arith.constant 0 : i32
    %c0_i32_0 = arith.constant 0 : i32
    %c0_i32_1 = arith.constant 0 : i32
    return %arg0, %c0_i32, %arg1, %c0_i32_0 : i32, i32, i32, i32
  }
  func.func @transform_1(%arg0: i32, %arg1: i32) -> (i32, i32, i32, i32) {
    %c0_i32 = arith.constant 0 : i32
    %c0_i32_0 = arith.constant 0 : i32
    %c0_i32_1 = arith.constant 0 : i32
    return %arg0, %c0_i32, %arg1, %c0_i32_0 : i32, i32, i32, i32
  }
  func.func @transform_2(%arg0: i32, %arg1: i32) -> (i32, i32) {
    %c0_i32 = arith.constant 0 : i32
    %c0_i32_0 = arith.constant 0 : i32
    %c0_i32_1 = arith.constant 0 : i32
    return %c0_i32, %c0_i32_0 : i32, i32
  }
  func.func @transform_3(%arg0: i32, %arg1: i32) -> (i32, i32) {
    %c0_i32 = arith.constant 0 : i32
    %c0_i32_0 = arith.constant 0 : i32
    %c0_i32_1 = arith.constant 0 : i32
    return %c0_i32, %c0_i32_0 : i32, i32
  }
  func.func @transform_4(%arg0: i32, %arg1: i32) -> (i32, i32) {
    %c0_i32 = arith.constant 0 : i32
    %c0_i32_0 = arith.constant 0 : i32
    %c0_i32_1 = arith.constant 0 : i32
    return %c0_i32, %c0_i32_0 : i32, i32
  }
  func.func @transform_5(%arg0: i32, %arg1: i32) -> (i32, i32) {
    %c0_i32 = arith.constant 0 : i32
    %c0_i32_0 = arith.constant 0 : i32
    %c0_i32_1 = arith.constant 0 : i32
    return %c0_i32, %c0_i32_0 : i32, i32
  }
  func.func @transform_6(%arg0: i32, %arg1: i32) -> (i32, i32, i32, i32) {
    %c0_i32 = arith.constant 0 : i32
    %c0_i32_0 = arith.constant 0 : i32
    %c0_i32_1 = arith.constant 0 : i32
    return %arg0, %c0_i32, %arg1, %c0_i32_0 : i32, i32, i32, i32
  }
}

</mosaic_0001>

<bundles_post_ra>
// kernel: tile.13
= control target key start
LH: loop header
LB: loop body
LE: loop exit
PB: predicated region body
PF: predicated region fallthrough
CT: control target
= control target key end

     0   :  { %s22_s0 = inlined_call_operand.vmem [shape: f32[32], index: 0, kind: input, shape index: {}]   ;;  %s23_s1 = inlined_call_operand.vmem [shape: f32[8,32], index: 1, kind: output, shape index: {}]  }
   0x1   :  { %v4_v0 = vld [vmem:[%s22_s0] ss:$0 sm:$0xff] }
   0x2   :  { %5 = vst [vmem:[%s23_s1] sm:$0xff] %v4_v0 }

// kernel: tile.14
= control target key start
LH: loop header
LB: loop body
LE: loop exit
PB: predicated region body
PF: predicated region fallthrough
CT: control target
= control target key end

     0   :  { %s7_s6 = smov 3  ;;  %s14_s9 = smov 3  ;;  %vm4_vm0 = vcmask 261120   ;;  %vm11_vm1 = vcmask 1048320   ;;  %vm18_vm2 = vcmask 785920   ;;  %vm25_vm3 = vcmask 523520   ;;  %s76_s0 = inlined_call_operand.vmem [shape: f32[8,32], index: 0, kind: input, shape index: {}]   ;;  %s77_s1 = inlined_call_operand.vmem [shape: f32[1,256], index: 1, kind: output, shape index: {}]  }
   0x1   :  { %v38_v0 = vld [vmem:[%s76_s0 + $0x3] ss:$4 sm:%s7_s6]   ;;  %s45_s10 = smov 96   ;;  %s21_s11 = smov 3  ;;  %v39_v1 = vld [vmem:[%s76_s0 + $0x2] ss:$4 sm:%s14_s9]  }
   0x2   :  { %9 = vrot.lane.b32.xlu0 %v38_v0, %s45_s10  ;;  %v40_v2 = vld [vmem:[%s76_s0 + $0x1] ss:$4 sm:%s21_s11]   ;;  %s2_s16 = smov 3  ;;  %s46_s17 = smov 32  }
   0x3   :  { %23 = vrot.lane.b32.xlu1 %v40_v2, %s46_s17  ;;  %v3_v3 = vld [vmem:[%s76_s0] ss:$4 sm:%s2_s16]   ;;  %s47_s0 = smov 64  }
   0x4   :  { %5 = vst.msk [vmem:[#allocation0] ss:$8 sm:$0x3] %vm4_vm0, %v3_v3  }
   0x6   :  { %16 = vrot.lane.b32.xlu0 %v39_v1, %s47_s0 }
  0x74   :  { %v10_v4 = vpop.permute.xlu0 %9  }
  0x75   :  { %12 = vst.msk [vmem:[#allocation0] ss:$8 sm:$0x3] %vm11_vm1, %v10_v4   ;;  %v24_v5 = vpop.permute.xlu1 %23  }
  0x78   :  { %v17_v6 = vpop.permute.xlu0 %16  }
  0x79   :  { %19 = vst.msk [vmem:[#allocation0] ss:$8 sm:$0x3] %vm18_vm2, %v17_v6  }
  0x7a   :  { %26 = vst.msk [vmem:[#allocation0] ss:$8 sm:$0x3] %vm25_vm3, %v24_v5  }
  0x81   :  { %v30_v7 = vld [vmem:[#allocation0] sm:$0x1]  ;;  %v34_v8 = vld [vmem:[#allocation0 + $0x8] sm:$0x1] }
  0x82   :  { %32 = vst [vmem:[%s77_s1] sm:$0x1] %v30_v7  ;;  %41 = vst [vmem:[%s77_s1 + $0x1] sm:$0x1] %v34_v8 }

// kernel: tbc_embedding_forward.1
= control target key start
LH: loop header
LB: loop body
LE: loop exit
PB: predicated region body
PF: predicated region fallthrough
CT: control target
= control target key end

     0   :  { %s1168_s21 = smov 0   ;;  %s1170_s22 = smov 0   ;;  %s1334_s0 = inlined_call_operand.vmem [shape: f32[2,3,1,48], index: 0, kind: input, shape index: {}]   ;;  %s1335_s1 = inlined_call_operand.vmem [shape: f32[2,2,1,32], index: 1, kind: input, shape index: {}]   ;;  %s1336_s2 = inlined_call_operand.vmem [shape: f32[48,256], index: 2, kind: input, shape index: {}]   ;;  %s1337_s3 = inlined_call_operand.vmem [shape: f32[1,256], index: 3, kind: input, shape index: {}]   ;;  %s1338_s4 = inlined_call_operand.vmem [shape: f32[32,256], index: 4, kind: input, shape index: {}]   ;;  %s1339_s5 = inlined_call_operand.vmem [shape: f32[1,256], index: 5, kind: input, shape index: {}]   ;;  %s1340_s6 = inlined_call_operand.vmem [shape: f32[2,9,1,256], index: 6, kind: output, shape index: {}]  }
   0x1   :  { %s1172_s23 = smov 0  }
   0x2 LB: > { %s28_s24 = sadd.s32 1, %s1125_s22  ;;  %p1007_p0 = scmp.ge.s32.totalorder %s1129_s23, 1  ;;  %s1129_s23 = sphi %s1172_s23, %s16_s23   ;;  %s1125_s22 = sphi %s1170_s22, %s1344_s22   ;;  %s1121_s21 = sphi %s1168_s21, %s1343_s21  }
   0x3   : > { %p30_p1 = scmp.ge.s32.totalorder %s28_s24, 2  ;;  %p244_p2 = scmp.lt.s32.totalorder %s1129_s23, 3 }
   0x5   : > { %s1346_s24 = smov (%p30_p1, %s28_s24), 0  ;;  %p245_p3 = pnand %p1007_p0, %p244_p2 }
   0x6   : > { %v434_v0 = vld [vmem:[%s1336_s2 + $0x8] sm:$0xff] (!%p245_p3)  ;;  %v436_v1 = vld [vmem:[%s1336_s2 + $0x18] sm:$0xff] (!%p245_p3)  ;;  %v433_v2 = vld [vmem:[%s1336_s2] sm:$0xff] (!%p245_p3)  ;;  %p286_p4 = scmp.lt.s32.totalorder (!%p245_p3), %s1121_s21, 1  ;;  %v1131_v7 = vmov (!%p245_p3), 0.0   ;;  %v323_v18 = vlaneseq (!%p245_p3)  ;;  %vm333_vm1 = vcmask (!%p245_p3), 392192  }
   0x7   : > { %248 = sbr.rel (%p245_p3) target bundleno = 259 (0x103), region = 44  ;;  %v1039_v3 = vpack.c.bf16 (!%p245_p3), %v436_v1, %v434_v0  ;;  %v435_v4 = vld [vmem:[%s1336_s2 + $0x10] sm:$0xff] (!%p245_p3)  ;;  %v438_v5 = vld [vmem:[%s1336_s2 + $0x28] sm:$0xff] (!%p245_p3)  ;;  %v440_v6 = vld [vmem:[%s1336_s2 + $0x38] sm:$0xff] (!%p245_p3)  ;;  %524 = vmatprep.mubr.f32.mxu1 (!%p245_p3), %v1131_v7  ;;  %401 = vmatprep.mubr.f32.mxu0 (!%p245_p3), %v1131_v7  ;;  %vm697_vm2 = vcmask (!%p245_p3), 261120  }
   0x8   : > { %v1041_v8 = vpack.c.bf16 (!%p245_p3), %v435_v4, %v433_v2  ;;  %v1043_v9 = vpack.c.bf16 (!%p245_p3), %v440_v6, %v438_v5  ;;  %v437_v10 = vld [vmem:[%s1336_s2 + $0x20] sm:$0xff] (!%p245_p3)  ;;  %v439_v11 = vld [vmem:[%s1336_s2 + $0x30] sm:$0xff] (!%p245_p3)  ;;  %v442_v12 = vld [vmem:[%s1336_s2 + $0x48] sm:$0xff] (!%p245_p3)  ;;  %vm1239_vm0 = vcmp.lt.s32.totalorder (!%p245_p3), %v323_v18, 256  ;;  %v324_v38 = vshrl.u32 (!%p245_p3), %v323_v18, 7 }
   0x9   : > { %1040 = vmatprep.subr.bf16.mxu1 (!%p245_p3), %v1039_v3  ;;  %1028 = vmatprep.subr.bf16.mxu0 (!%p245_p3), %v1039_v3  ;;  %v444_v13 = vld [vmem:[%s1336_s2 + $0x58] sm:$0xff] (!%p245_p3)  ;;  %v1045_v14 = vpack.c.bf16 (!%p245_p3), %v439_v11, %v437_v10  ;;  %v441_v16 = vld [vmem:[%s1336_s2 + $0x40] sm:$0xff] (!%p245_p3)  ;;  %v443_v17 = vld [vmem:[%s1336_s2 + $0x50] sm:$0xff] (!%p245_p3)  ;;  %v1132_v40 = vmov (!%p245_p3), 1966171168  }
   0xa   : > { %1042 = vmatpush1.bf16.msra.mxu1 (!%p245_p3), %v1041_v8  ;;  %1030 = vmatpush1.bf16.msra.mxu0 (!%p245_p3), %v1041_v8  ;;  %v1047_v15 = vpack.c.bf16 (!%p245_p3), %v444_v13, %v442_v12  ;;  %v678_v19 = vld [vmem:[%s1338_s4 + $0x8] sm:$0xff] (!%p245_p3)  ;;  %v680_v20 = vld [vmem:[%s1338_s4 + $0x18] sm:$0xff] (!%p245_p3)  ;;  %v1049_v22 = vpack.c.bf16 (!%p245_p3), %v443_v17, %v441_v16  ;;  %v677_v24 = vld [vmem:[%s1338_s4] sm:$0xff] (!%p245_p3)  ;;  %v325_v39 = vsub.s32 (!%p245_p3), 0, %v324_v38  ;;  %v412_v41 = vunpack.c.l.s4 (!%p245_p3), %v1132_v40 }
   0xb   : > { %1044 = vmatprep.subr.bf16.mxu1 (!%p245_p3), %v1043_v9  ;;  %1032 = vmatprep.subr.bf16.mxu0 (!%p245_p3), %v1043_v9  ;;  %v1063_v23 = vpack.c.bf16 (!%p245_p3), %v680_v20, %v678_v19  ;;  %v679_v25 = vld [vmem:[%s1338_s4 + $0x10] sm:$0xff] (!%p245_p3)  ;;  %v682_v26 = vld [vmem:[%s1338_s4 + $0x28] sm:$0xff] (!%p245_p3)  ;;  %v684_v27 = vld [vmem:[%s1338_s4 + $0x38] sm:$0xff] (!%p245_p3)  ;;  %v329_v43 = vsub.s32 (!%p245_p3), 1, %v324_v38 }
   0xc   : > { %v1065_v29 = vpack.c.bf16 (!%p245_p3), %v679_v25, %v677_v24  ;;  %v1067_v31 = vpack.c.bf16 (!%p245_p3), %v684_v27, %v682_v26  ;;  %v681_v32 = vld [vmem:[%s1338_s4 + $0x20] sm:$0xff] (!%p245_p3)  ;;  %v683_v33 = vld [vmem:[%s1338_s4 + $0x30] sm:$0xff] (!%p245_p3)  ;;  %v413_v47 = vunpack.c.0.s8 (!%p245_p3), %v412_v41 }
   0xd   : > { %v1069_v34 = vpack.c.bf16 (!%p245_p3), %v683_v33, %v681_v32  ;;  %v445_v42 = vld [vmem:[%s1337_s3] sm:$0x3] (!%p245_p3) }
   0xe   : > { %s1348_s21 = smov (!%p286_p4, %s1121_s21), 1  ;;  %1046 = vmatpush1.bf16.msra.mxu1 %v1045_v14  ;;  %1034 = vmatpush1.bf16.msra.mxu0 %v1045_v14  ;;  %v321_v44 = vld [vmem:[%s1337_s3] sm:$0x3]  ;;  %v450_v45 = vrot.slane %v445_v42, %v325_v39  ;;  %v454_v48 = vrot.slane %v445_v42, %v329_v43  ;;  %v416_v56 = vsub.s32 %v413_v47, %v324_v38 }
   0xf   : > { %s1079_s25 = smul.u32 3, %s1348_s21  ;;  %1048 = vmatprep.subr.bf16.mxu1 %v1047_v15  ;;  %1036 = vmatprep.subr.bf16.mxu0 %v1047_v15  ;;  %s1008_s9 = sshll.u32 %s1348_s21, 1  ;;  %v326_v46 = vrot.slane %v321_v44, %v325_v39  ;;  %v330_v49 = vrot.slane %v321_v44, %v329_v43  ;;  %v685_v59 = vld [vmem:[%s1339_s5] sm:$0x3] }
  0x10   : > { %s1080_s30 = smul.u32 18, %s1348_s21  ;;  %s299_s12 = scalar_lea.vmem %s1335_s1, %s1008_s9  ;;  %v690_v62 = vrot.slane %v685_v59, %v325_v39  ;;  %v694_v1 = vrot.slane %v685_v59, %v329_v43  ;;  %v565_v2 = vld [vmem:[%s1337_s3] sm:$0x3] }
  0x11   : > { %s1262_s16 = scalar_lea.vmem %s1334_s0, %s1079_s25  ;;  %v676_v35 = vld [vmem:[%s299_s12] sm:$0x1]  ;;  %v1022_v37 = vld [vmem:[%s299_s12 + $0x1] sm:$0x1]  ;;  %v574_v10 = vrot.slane %v565_v2, %v329_v43 }
  0x12   : > { %s1237_s13 = scalar_lea.vmem %s1340_s6, %s1080_s30  ;;  %1050 = vmatpush1.bf16.msra.mxu1 %v1049_v22  ;;  %1038 = vmatpush1.bf16.msra.mxu0 %v1049_v22  ;;  %v1010_v28 = vld [vmem:[%s1262_s16 + $0x1] sm:$0x1]  ;;  %v308_v30 = vld [vmem:[%s1262_s16] sm:$0x1]  ;;  %v1013_v36 = vld [vmem:[%s1262_s16 + $0x2] sm:$0x1] }
  0x13   : > { %1016 = vst.msk [vmem:[%s1237_s13 + $0x6] sm:$0x3] %vm1239_vm0, %v1131_v7  ;;  %1017 = vst.msk [vmem:[%s1237_s13 + $0x8] sm:$0x3] %vm1239_vm0, %v1131_v7  ;;  %1064 = vmatprep.subr.bf16.mxu1 %v1063_v23  ;;  %1052 = vmatprep.subr.bf16.mxu0 %v1039_v3  ;;  %v802_v11 = vld [vmem:[%s1339_s5] sm:$0x3] }
  0x14   : > { %1018 = vst.msk [vmem:[%s1237_s13 + $0xa] sm:$0x3] %vm1239_vm0, %v1131_v7  ;;  %1019 = vst.msk [vmem:[%s1237_s13 + $0xc] sm:$0x3] %vm1239_vm0, %v1131_v7  ;;  %v807_v16 = vrot.slane %v802_v11, %v325_v39  ;;  %v811_v19 = vrot.slane %v802_v11, %v329_v43 }
  0x15   : > { %1011 = vmatmul.mubr.msk.f32.vlgmr.msra.gmra.mrb[0].mxu1 %vm333_vm1, %v1010_v28  ;;  %1009 = vmatmul.mubr.msk.f32.vlgmr.msra.gmra.mrb[0].mxu0 %vm333_vm1, %v308_v30 }
  0x16   : > { %1066 = vmatpush1.bf16.msra.mxu1 %v1065_v29  ;;  %1054 = vmatpush1.bf16.msra.mxu0 %v1041_v8  ;;  %v570_v8 = vrot.slane %v565_v2, %v325_v39 }
  0x17   : > { %1068 = vmatprep.subr.bf16.mxu1 %v1067_v31  ;;  %1056 = vmatprep.subr.bf16.mxu0 %v1043_v9 }
  0x18   : > { %765 = vmatprep.mubr.f32.mxu1 %v1131_v7  ;;  %644 = vmatprep.mubr.f32.mxu0 %v1131_v7 }
  0x1a   : > { %1070 = vmatpush1.bf16.msra.mxu1 %v1069_v34  ;;  %1058 = vmatpush1.bf16.msra.mxu0 %v1045_v14 }
  0x1b   : > { %1072 = vmatprep.subr.bf16.mxu1 %v1063_v23  ;;  %1060 = vmatprep.subr.bf16.mxu0 %v1047_v15 }
  0x1d   : > { %1020 = vmatmul.mubr.msk.f32.vlgmr.msra.gmra.mrb[2].mxu1 %vm697_vm2, %v676_v35 }
  0x1e   : > { %1074 = vmatpush1.bf16.msra.mxu1 %v1065_v29  ;;  %1062 = vmatpush1.bf16.msra.mxu0 %v1049_v22 }
  0x1f   : > { %1076 = vmatprep.subr.bf16.mxu1 %v1067_v31  ;;  %881 = vmatprep.mubr.f32.mxu1 %v1131_v7 }
  0x21   : > { %1014 = vmatmul.mubr.msk.f32.vlgmr.msra.gmra.mrb[2].mxu0 %vm333_vm1, %v1013_v36 }
  0x22   : > { %1078 = vmatpush1.bf16.msra.mxu1 %v1069_v34 }
  0x25   : > { %1023 = vmatmul.mubr.msk.f32.vlgmr.msra.gmra.mrb[4].mxu1 %vm697_vm2, %v1022_v37 }
  0xe8   : > { %v526_v50 = vpop.f32.mrb[0].mxu1  ;;  %v403_v51 = vpop.f32.mrb[0].mxu0 }
  0xe9   : > { %v527_v52 = vadd.f32 %v526_v50, %v450_v45  ;;  %v528_v53 = vpop.f32.mrb[1].mxu1  ;;  %v404_v54 = vadd.f32 %v403_v51, %v326_v46  ;;  %v405_v55 = vpop.f32.mrb[1].mxu0 }
  0xea   : > { %v529_v57 = vadd.f32 %v528_v53, %v454_v48  ;;  %v406_v58 = vadd.f32 %v405_v55, %v330_v49 }
  0xec   : > { %v533_v60 = vcombine.low %v527_v52, %v529_v57  ;;  %v410_v61 = vcombine.low %v404_v54, %v406_v58 }
  0xee   : > { %v540_v63 = vrot.slane %v533_v60, %v416_v56  ;;  %v417_v0 = vrot.slane %v410_v61, %v416_v56 }
  0xf0   : > { %v547_v3 = vrot.slane %v540_v63, %v416_v56  ;;  %v424_v4 = vrot.slane %v417_v0, %v416_v56  ;;  %v767_v5 = vpop.f32.mrb[2].mxu1 }
  0xf1   : > { %v768_v6 = vadd.f32 %v767_v5, %v690_v62  ;;  %v769_v7 = vpop.f32.mrb[3].mxu1 }
  0xf2   : > { %1012 = vst.msk [vmem:[%s1237_s13 + $0x2] sm:$0x3] %vm1239_vm0, %v547_v3  ;;  %430 = vst.msk [vmem:[%s1237_s13] sm:$0x3] %vm1239_vm0, %v424_v4  ;;  %v770_v9 = vadd.f32 %v769_v7, %v694_v1 }
  0xf4   : > { %v774_v12 = vcombine.low %v768_v6, %v770_v9  ;;  %v646_v13 = vpop.f32.mrb[2].mxu0 }
  0xf5   : > { %v647_v14 = vadd.f32 %v646_v13, %v570_v8  ;;  %v648_v15 = vpop.f32.mrb[3].mxu0 }
  0xf6   : > { %v781_v17 = vrot.slane %v774_v12, %v416_v56  ;;  %v649_v18 = vadd.f32 %v648_v15, %v574_v10 }
  0xf8   : > { %v788_v20 = vrot.slane %v781_v17, %v416_v56  ;;  %v653_v22 = vcombine.low %v647_v14, %v649_v18  ;;  %v883_v23 = vpop.f32.mrb[4].mxu1 }
  0xf9   : > { %v884_v24 = vadd.f32 %v883_v23, %v807_v16  ;;  %v885_v25 = vpop.f32.mrb[5].mxu1 }
  0xfa   : > { %1021 = vst.msk [vmem:[%s1237_s13 + $0xe] sm:$0x3] %vm1239_vm0, %v788_v20  ;;  %v660_v26 = vrot.slane %v653_v22, %v416_v56  ;;  %v886_v27 = vadd.f32 %v885_v25, %v811_v19 }
  0xfc   : > { %v667_v28 = vrot.slane %v660_v26, %v416_v56  ;;  %v890_v29 = vcombine.low %v884_v24, %v886_v27 }
  0xfe   : > { %1015 = vst.msk [vmem:[%s1237_s13 + $0x4] sm:$0x3] %vm1239_vm0, %v667_v28  ;;  %v897_v30 = vrot.slane %v890_v29, %v416_v56 }
 0x100   : > { %v904_v31 = vrot.slane %v897_v30, %v416_v56 }
 0x102   : > { %1024 = vst.msk [vmem:[%s1237_s13 + $0x10] sm:$0x3] %vm1239_vm0, %v904_v31 }
 0x103 PF: > { %s16_s23 = sadd.s32 1, %s1129_s23   ;;  %s1343_s21 = smov %s1125_s22 }
 0x104   : > { %p13_p5 = scmp.ge.s32.totalorder %s16_s23, 4   ;;  %s1344_s22 = smov %s1346_s24 }
 0x106   :  { %15 = sbr.rel (!%p13_p5) target bundleno = 2 (0x2), region = 85 }

</bundles_post_ra>
